<compile_context>
chip_gen: v5e
topology: v5e:2x2
jax: 0.10.0
libtpu: 0.0.40
codegen_flags: <defaults>
</compile_context>

<pallas_src>
import jax
import jax.numpy as jnp
from jax.experimental import pallas as pl
from jax.experimental.pallas import tpu as pltpu

KSIZE = 3   # 3x3 neighborhood, padding 1


def _round_up(a: int, b: int) -> int:
    return (a + b - 1) // b * b


def _make_kernel(H: int, W: int):
    HW = H * W

    def kernel(x_ref, w_ref, b_ref, m_ref, o_ref):
        # x_ref: (TN, HW)  TN batch rows on sublanes, flattened spatial on lanes
        # w_ref: (1, HW)   grid weight (sublane-broadcast inside the kernel)
        # b_ref: (1, HW)   grid bias
        # m_ref: (4, HW)   0/1 border masks [has_left, has_right, has_up, has_down]
        # o_ref: (TN, HW)
        xv = x_ref[...].astype(jnp.float32)
        wv = w_ref[...].astype(jnp.float32)
        bv = b_ref[...].astype(jnp.float32)
        mv = m_ref[...]
        has_l = mv[0:1, :]
        has_r = mv[1:2, :]
        has_u = mv[2:3, :]
        has_d = mv[3:4, :]

        z = xv * wv                                  # elementwise product (VPU)

        # Separable 3x3 box sum with zero boundaries: circular lane rolls (XLU)
        # bring the +-1 (column) and +-W (row) neighbors to each position; the
        # wrapped values at the grid border are zeroed by the masks. No padded
        # temporaries, no unaligned slices -> no relayout copies.
        s = (z
             + pltpu.roll(z, 1, 1) * has_l           # z[p-1]  (left neighbor)
             + pltpu.roll(z, HW - 1, 1) * has_r)     # z[p+1]  (right neighbor)
        acc = (s
               + pltpu.roll(s, W, 1) * has_u         # s[p-W]  (upper row)
               + pltpu.roll(s, HW - W, 1) * has_d)   # s[p+W]  (lower row)

        # TODO(synk): torch.sin kept exact (jnp.sin); a cheaper polynomial could
        # relieve VALU pressure on v7x if accuracy requirements allow it.
        o_ref[...] = jnp.sin(acc + bv).astype(o_ref.dtype)

    return kernel


def grid_layer_forward(x, weight, bias, *, tn_max=1024):
    """x: (N, C, H, W); weight: (1, 1, H, W); bias: (H, W) -> (N*C, 1, H, W)."""
    N, C, H, W = x.shape
    assert H == W, "module's bias broadcast requires a square grid"
    NB = N * C
    HW = H * W
    itemsize = jnp.dtype(x.dtype).itemsize

    # Tile the batch (sublane) axis. Keep per-buffer blocks around <= 512 KiB
    # so double-buffered in/out plus f32 intermediates fit comfortably in the
    # scoped-VMEM defaults on every generation (v5e 16 MiB, v6e/v7x 32 MiB).
    cap = max(8, ((512 * 1024) // (HW * 4)) // 8 * 8)
    nb8 = _round_up(NB, 8)
    tn = max(8, min(tn_max, cap, nb8) // 8 * 8)
    # Give the (parallel) batch grid axis >= 4 steps when the batch permits,
    # so v7x's two TensorCores get work and the pipeline has some depth.
    if nb8 // tn < 4 and nb8 >= 32:
        tn = max(8, _round_up(pl.cdiv(nb8, 4), 8))
    npad = _round_up(NB, tn)

    # Free relayout: contiguous NCHW -> (N*C, H*W) is a metadata-only reshape
    # (no HBM read/write), unlike the previous HWN transposes which each cost
    # a full extra pass over the tensor.
    x2 = x.reshape(NB, HW)
    if npad != NB:
        x2 = jnp.pad(x2, ((0, npad - NB), (0, 0)))

    w2 = weight.reshape(1, HW)
    b2 = bias.reshape(1, HW)

    # Border masks, computed once on the host side (avoids int div/rem on the
    # VPU inside the kernel). Tiny, constant-index-map inputs.
    pos = jnp.arange(HW, dtype=jnp.int32)
    col = pos % W
    row = pos // W
    masks = jnp.stack(
        [col != 0, col != W - 1, row != 0, row != H - 1]
    ).astype(jnp.float32)                            # (4, HW)

    cost = pl.CostEstimate(
        flops=10 * npad * HW,
        transcendentals=npad * HW,
        bytes_accessed=npad * HW * 2 * itemsize + 6 * HW * 4,
    )

    out = pl.pallas_call(
        _make_kernel(H, W),
        out_shape=jax.ShapeDtypeStruct((npad, HW), x.dtype),
        grid=(npad // tn,),
        in_specs=[
            pl.BlockSpec((tn, HW), lambda n: (n, 0)),
            pl.BlockSpec((1, HW), lambda n: (0, 0)),
            pl.BlockSpec((1, HW), lambda n: (0, 0)),
            pl.BlockSpec((4, HW), lambda n: (0, 0)),
        ],
        out_specs=pl.BlockSpec((tn, HW), lambda n: (n, 0)),
        compiler_params=pltpu.CompilerParams(
            dimension_semantics=("parallel",),
        ),
        cost_estimate=cost,
    )(x2, w2, b2, masks)

    # Padded (garbage) batch rows compute sin(bias); slice them off before the
    # result escapes. Reshape back to NCHW is again metadata-only.
    if npad != NB:
        out = out[:NB]
    return out.reshape(NB, 1, H, W)


def grid_layer_ref(x, weight, bias):
    """Pure-JAX reference of the same math (channels folded into batch)."""
    N, C, H, W = x.shape
    z = x.reshape(N * C, H, W) * weight.reshape(H, W)
    zp = jnp.pad(z, ((0, 0), (1, 1), (1, 1)))
    acc = jnp.zeros_like(z)
    for ki in range(KSIZE):
        for kj in range(KSIZE):
            acc = acc + zp[:, ki:ki + H, kj:kj + W]
    return jnp.sin(acc + bias)[:, None, :, :]


if __name__ == "__main__":
    # Small square grid (module requires image_height == image_width).
    N, C, H, W = 2, 4, 16, 16
    key = jax.random.PRNGKey(0)
    kx, kw = jax.random.split(key)

    x = jax.random.normal(kx, (N, C, H, W), dtype=jnp.float32)

    # Deterministic xavier-style init: fan_in = fan_out = 3*3 = 9
    limit = (6.0 / (9 + 9)) ** 0.5
    weight = jax.random.uniform(
        kw, (1, 1, H, W), dtype=jnp.float32, minval=-limit, maxval=limit
    )
    bias = jnp.zeros((H, W), dtype=jnp.float32)

    out = grid_layer_forward(x, weight, bias)
    out = jax.block_until_ready(out)

    ref = grid_layer_ref(x, weight, bias)
    assert out.shape == (N * C, 1, H, W)
    assert jnp.allclose(out, ref, atol=1e-5, rtol=1e-5), "mismatch vs reference"

    print("KERNEL_OK")
</pallas_src>

<mosaic_0001>
module attributes {stable_mosaic.version = 11 : i64} {
  func.func @kernel(%arg0: i32, %arg1: memref<8x256xf32, #tpu.memory_space<vmem>>, %arg2: memref<1x256xf32, #tpu.memory_space<vmem>>, %arg3: memref<1x256xf32, #tpu.memory_space<vmem>>, %arg4: memref<4x256xf32, #tpu.memory_space<vmem>>, %arg5: memref<8x256xf32, #tpu.memory_space<vmem>>) attributes {dimension_semantics = [#tpu.dimension_semantics<parallel>], iteration_bounds = array<i64: 1>, scalar_prefetch = 0 : i64, scratch_operands = 0 : i64, tpu.core_type = #tpu.core_type<tc>, window_params = [{transform_indices = @transform_0, window_bounds = array<i64: 8, 256>}, {pipeline_mode = #tpu.pipeline_mode<synchronous>, transform_indices = @transform_1, window_bounds = array<i64: 1, 256>}, {pipeline_mode = #tpu.pipeline_mode<synchronous>, transform_indices = @transform_2, window_bounds = array<i64: 1, 256>}, {pipeline_mode = #tpu.pipeline_mode<synchronous>, transform_indices = @transform_3, window_bounds = array<i64: 4, 256>}, {transform_indices = @transform_4, window_bounds = array<i64: 8, 256>}]} {
    %c0 = arith.constant 0 : index
    %c0_0 = arith.constant 0 : index
    %0 = vector.load %arg1[%c0, %c0_0] : memref<8x256xf32, #tpu.memory_space<vmem>>, vector<8x256xf32>
    %c0_1 = arith.constant 0 : index
    %c0_2 = arith.constant 0 : index
    %1 = vector.load %arg2[%c0_1, %c0_2] : memref<1x256xf32, #tpu.memory_space<vmem>>, vector<1x256xf32>
    %c0_3 = arith.constant 0 : index
    %c0_4 = arith.constant 0 : index
    %2 = vector.load %arg3[%c0_3, %c0_4] : memref<1x256xf32, #tpu.memory_space<vmem>>, vector<1x256xf32>
    %c0_5 = arith.constant 0 : index
    %c0_6 = arith.constant 0 : index
    %3 = vector.load %arg4[%c0_5, %c0_6] : memref<4x256xf32, #tpu.memory_space<vmem>>, vector<4x256xf32>
    %4 = vector.extract_strided_slice %3 {offsets = [0, 0], sizes = [1, 256], strides = [1, 1]} : vector<4x256xf32> to vector<1x256xf32>
    %5 = vector.extract_strided_slice %3 {offsets = [1, 0], sizes = [1, 256], strides = [1, 1]} : vector<4x256xf32> to vector<1x256xf32>
    %6 = vector.extract_strided_slice %3 {offsets = [2, 0], sizes = [1, 256], strides = [1, 1]} : vector<4x256xf32> to vector<1x256xf32>
    %7 = vector.extract_strided_slice %3 {offsets = [3, 0], sizes = [1, 256], strides = [1, 1]} : vector<4x256xf32> to vector<1x256xf32>
    %8 = vector.broadcast %1 : vector<1x256xf32> to vector<8x256xf32>
    %9 = arith.mulf %0, %8 : vector<8x256xf32>
    %c1_i32 = arith.constant 1 : i32
    %10 = tpu.dynamic_rotate %9 by %c1_i32 dim 1 : vector<8x256xf32>, i32 -> vector<8x256xf32>
    %11 = vector.broadcast %4 : vector<1x256xf32> to vector<8x256xf32>
    %12 = arith.mulf %10, %11 : vector<8x256xf32>
    %13 = arith.addf %9, %12 : vector<8x256xf32>
    %c255_i32 = arith.constant 255 : i32
    %14 = tpu.dynamic_rotate %9 by %c255_i32 dim 1 : vector<8x256xf32>, i32 -> vector<8x256xf32>
    %15 = vector.broadcast %5 : vector<1x256xf32> to vector<8x256xf32>
    %16 = arith.mulf %14, %15 : vector<8x256xf32>
    %17 = arith.addf %13, %16 : vector<8x256xf32>
    %c16_i32 = arith.constant 16 : i32
    %18 = tpu.dynamic_rotate %17 by %c16_i32 dim 1 : vector<8x256xf32>, i32 -> vector<8x256xf32>
    %19 = vector.broadcast %6 : vector<1x256xf32> to vector<8x256xf32>
    %20 = arith.mulf %18, %19 : vector<8x256xf32>
    %21 = arith.addf %17, %20 : vector<8x256xf32>
    %c240_i32 = arith.constant 240 : i32
    %22 = tpu.dynamic_rotate %17 by %c240_i32 dim 1 : vector<8x256xf32>, i32 -> vector<8x256xf32>
    %23 = vector.broadcast %7 : vector<1x256xf32> to vector<8x256xf32>
    %24 = arith.mulf %22, %23 : vector<8x256xf32>
    %25 = arith.addf %21, %24 : vector<8x256xf32>
    %26 = vector.broadcast %2 : vector<1x256xf32> to vector<8x256xf32>
    %27 = arith.addf %25, %26 : vector<8x256xf32>
    %28 = math.sin %27 : vector<8x256xf32>
    %c0_7 = arith.constant 0 : index
    %c0_8 = arith.constant 0 : index
    %29 = vector.load %arg5[%c0_7, %c0_8] : memref<8x256xf32, #tpu.memory_space<vmem>>, vector<8x256xf32>
    tpu.vector_store %arg5[%c0_7, %c0_8], %28 {strides = array<i32>} : memref<8x256xf32, #tpu.memory_space<vmem>>, vector<8x256xf32>,
    return
  }
  func.func @transform_0(%arg0: i32) -> (i32, i32) {
    %c0_i32 = arith.constant 0 : i32
    %c0_i32_0 = arith.constant 0 : i32
    return %arg0, %c0_i32 : i32, i32
  }
  func.func @transform_1(%arg0: i32) -> (i32, i32) {
    %c0_i32 = arith.constant 0 : i32
    %c0_i32_0 = arith.constant 0 : i32
    %c0_i32_1 = arith.constant 0 : i32
    return %c0_i32, %c0_i32_0 : i32, i32
  }
  func.func @transform_2(%arg0: i32) -> (i32, i32) {
    %c0_i32 = arith.constant 0 : i32
    %c0_i32_0 = arith.constant 0 : i32
    %c0_i32_1 = arith.constant 0 : i32
    return %c0_i32, %c0_i32_0 : i32, i32
  }
  func.func @transform_3(%arg0: i32) -> (i32, i32) {
    %c0_i32 = arith.constant 0 : i32
    %c0_i32_0 = arith.constant 0 : i32
    %c0_i32_1 = arith.constant 0 : i32
    return %c0_i32, %c0_i32_0 : i32, i32
  }
  func.func @transform_4(%arg0: i32) -> (i32, i32) {
    %c0_i32 = arith.constant 0 : i32
    %c0_i32_0 = arith.constant 0 : i32
    return %arg0, %c0_i32 : i32, i32
  }
}

</mosaic_0001>

<bundles_post_ra>
// kernel: tpu_custom_call.1
= control target key start
LH: loop header
LB: loop body
LE: loop exit
PB: predicated region body
PF: predicated region fallthrough
CT: control target
= control target key end

     0   :  { %9 = vsyncpa [#allocation3], 0  ;;  %s879_s0 = inlined_call_operand.hbm [shape: f32[8,256], index: 0, kind: input, shape index: {}]   ;;  %s880_s1 = inlined_call_operand.hbm [shape: f32[1,256], index: 1, kind: input, shape index: {}]   ;;  %s881_s2 = inlined_call_operand.hbm [shape: f32[1,256], index: 2, kind: input, shape index: {}]   ;;  %s882_s3 = inlined_call_operand.hbm [shape: f32[4,256], index: 3, kind: input, shape index: {}]   ;;  %s883_s4 = inlined_call_operand.hbm [shape: f32[8,256], index: 4, kind: output, shape index: {}]  }
   0x1   :  { %10 = vsyncpa [#allocation6], 0 }
   0x2   :  { %11 = vsyncpa [#allocation9], 0  ;;  %s29_s17 = sshll.u32 %s880_s1, 4  ;;  %s30_s17 = int_to_ptr.hbm [resolvable:$true] %s29_s17 }
   0x3   :  { %12 = vsyncpa [#allocation4], 0  ;;  %s644_s18 = smov [#allocation5]   ;;  %s18_s22 = sshll.u32 %s879_s0, 4  ;;  %s19_s22 = int_to_ptr.hbm [resolvable:$true] %s18_s22 }
   0x4   :  { %s31_s19 = sshll.u32 %s644_s18, 4  ;;  %s645_s23 = smov [#allocation2]   ;;  %s32_s19 = int_to_ptr.vmem [resolvable:$true] %s31_s19 }
   0x5   :  { %34 = dma.hbm_to_vmem [thread:$0]  %s30_s17, 32, %s32_s19, [#allocation6]  }
   0x6   :  { %s20_s24 = sshll.u32 %s645_s23, 4  ;;  %s40_s27 = sshll.u32 %s881_s2, 4  ;;  %s21_s24 = int_to_ptr.vmem [resolvable:$true] %s20_s24  ;;  %s41_s27 = int_to_ptr.hbm [resolvable:$true] %s40_s27 }
   0x7   :  { %23 = dma.hbm_to_vmem [thread:$0]  %s19_s22, 256, %s21_s24, [#allocation3]  }
   0x8   :  { %s51_s29 = sshll.u32 %s882_s3, 4  ;;  %s646_s30 = smov [#allocation7]   ;;  %s52_s29 = int_to_ptr.hbm [resolvable:$true] %s51_s29 }
   0x9   :  { %s42_s5 = sshll.u32 %s646_s30, 4  ;;  %s647_s0 = smov [#allocation8]   ;;  %s43_s5 = int_to_ptr.vmem [resolvable:$true] %s42_s5 }
   0xa   :  { %45 = dma.hbm_to_vmem [thread:$0]  %s41_s27, 32, %s43_s5, [#allocation6]  }
   0xb   :  { %s53_s6 = sshll.u32 %s647_s0, 4  ;;  %s54_s6 = int_to_ptr.vmem [resolvable:$true] %s53_s6 }
   0xc   :  { %56 = dma.hbm_to_vmem [thread:$0]  %s52_s29, 128, %s54_s6, [#allocation9]  }
   0xd   :  { %636 = dma.done.wait [#allocation3], 256  }
   0xe   :  { %637 = vsyncadd [#allocation3], 4294967040 }
   0xf   :  { %638 = dma.done.wait [#allocation6], 64  }
  0x10   :  { %639 = vsyncadd [#allocation6], 4294967232 }
  0x11   :  { %640 = dma.done.wait [#allocation9], 128  }
  0x12   :  { %641 = vsyncadd [#allocation9], 4294967168  ;;  %v73_v0 = vld [vmem:[#allocation2] sm:$0xff]  ;;  %v75_v1 = vld [vmem:[#allocation5] sm:$0x3]  ;;  %s648_s2 = smov 127   ;;  %v89_v7 = vlaneseq }
  0x13   :  { %v79_v2 = vperm.slane %v75_v1, 0  ;;  %s649_s3 = smov 1   ;;  %v80_v4 = vperm.slane %v75_v1, 1  ;;  %v74_v5 = vld [vmem:[#allocation2 + $0x8] sm:$0xff]  ;;  %v77_v8 = vld [vmem:[#allocation8] sm:$0xff]  ;;  %s650_s7 = smov 112  }
  0x14   :  { %v90_v11 = vand.u32 127, %v89_v7  ;;  %v95_v12 = vperm.slane %v77_v8, 0  ;;  %v96_v13 = vperm.slane %v77_v8, 4  ;;  %v112_v14 = vperm.slane %v77_v8, 1  ;;  %s651_s8 = smov 16   ;;  %s659_s9 = smov [#allocation10]  }
  0x15   :  { %v83_v3 = vmul.f32 %v79_v2, %v73_v0  ;;  %v84_v6 = vmul.f32 %v80_v4, %v74_v5  ;;  %v113_v15 = vperm.slane %v77_v8, 5  ;;  %v129_v35 = vperm.slane %v77_v8, 2  ;;  %v76_v46 = vld [vmem:[#allocation7] sm:$0x3]  ;;  %s480_s10 = sshll.u32 %s659_s9, 4  ;;  %s482_s13 = sshll.u32 %s883_s4, 4  ;;  %s481_s10 = int_to_ptr.vmem [resolvable:$true] %s480_s10  ;;  %s483_s13 = int_to_ptr.hbm [resolvable:$true] %s482_s13 }
  0x16   :  { %vm109_vm0 = vcmp.lt.s32.totalorder %v90_v11, 127  ;;  %vm91_vm1 = vcmp.lt.s32.totalorder %v90_v11, 1  ;;  %v99_v16 = vperm.slane %v95_v12, 0  ;;  %v100_v17 = vperm.slane %v96_v13, 0 }
  0x17   :  { %105 = vrot.lane.b32.xlu1 %v83_v3, %s648_s2  ;;  %85 = vrot.lane.b32.xlu0 %v83_v3, %s649_s3  ;;  %v116_v18 = vperm.slane %v112_v14, 1  ;;  %v117_v19 = vperm.slane %v113_v15, 1  ;;  %v130_v36 = vperm.slane %v77_v8, 6  ;;  %vm126_vm2 = vcmp.lt.s32.totalorder %v90_v11, 16 }
  0x18   :  { %v133_v38 = vperm.slane %v129_v35, 2  ;;  %v146_v40 = vperm.slane %v77_v8, 3  ;;  %v147_v41 = vperm.slane %v77_v8, 7  ;;  %vm143_vm3 = vcmp.lt.s32.totalorder %v90_v11, 112 }
  0x19   :  { %v134_v39 = vperm.slane %v130_v36, 2  ;;  %v157_v51 = vperm.slane %v76_v46, 0  ;;  %v158_v52 = vperm.slane %v76_v46, 1 }
  0x1a   :  { %v150_v47 = vperm.slane %v146_v40, 3  ;;  %v151_v48 = vperm.slane %v147_v41, 3 }
  0x1f   :  { %107 = vrot.lane.b32.xlu1 %v84_v6, %s648_s2  ;;  %87 = vrot.lane.b32.xlu0 %v84_v6, %s649_s3 }
  0x89   :  { %v106_v9 = vpop.permute.xlu1 %105  ;;  %v86_v10 = vpop.permute.xlu0 %85 }
  0x91   :  { %v108_v20 = vpop.permute.xlu1 %107  ;;  %v88_v21 = vpop.permute.xlu0 %87 }
  0x92   :  { %v110_v22 = vsel %vm109_vm0, %v106_v9, %v108_v20  ;;  %v111_v23 = vsel %vm109_vm0, %v108_v20, %v106_v9  ;;  %v92_v24 = vsel %vm91_vm1, %v86_v10, %v88_v21  ;;  %v93_v25 = vsel %vm91_vm1, %v88_v21, %v86_v10 }
  0x93   :  { %v101_v26 = vmul.f32 %v99_v16, %v93_v25  ;;  %v102_v27 = vmul.f32 %v100_v17, %v92_v24  ;;  %v118_v28 = vmul.f32 %v116_v18, %v110_v22  ;;  %v119_v29 = vmul.f32 %v117_v19, %v111_v23 }
  0x94   :  { %v652_v20 = vmov 2102212464   ;;  %v653_v25 = vmov 920167782  }
  0x95   :  { %v103_v30 = vadd.f32 %v101_v26, %v83_v3  ;;  %v104_v31 = vadd.f32 %v102_v27, %v84_v6 }
  0x97   :  { %v120_v32 = vadd.f32 %v118_v28, %v103_v30  ;;  %v121_v33 = vadd.f32 %v119_v29, %v104_v31  ;;  %v654_v28 = vmov 1326507024  }
  0x99   :  { %139 = vrot.lane.b32.xlu0 %v120_v32, %s650_s7  ;;  %122 = vrot.lane.b32.xlu2 %v120_v32, %s651_s8 }
  0x9a   :  { %141 = vrot.lane.b32.xlu1 %v121_v33, %s650_s7 }
  0xa1   :  { %124 = vrot.lane.b32.xlu2 %v121_v33, %s651_s8 }
  0xf3   :  { %v123_v34 = vpop.permute.xlu2 %122 }
  0xfb   :  { %v125_v37 = vpop.permute.xlu2 %124 }
  0xfc   :  { %v127_v42 = vsel %vm126_vm2, %v123_v34, %v125_v37  ;;  %v128_v43 = vsel %vm126_vm2, %v125_v37, %v123_v34  ;;  %v656_v34 = vmov 2475754826  }
  0xfd   :  { %v135_v44 = vmul.f32 %v133_v38, %v128_v43  ;;  %v136_v45 = vmul.f32 %v134_v39, %v127_v42  ;;  %v657_v39 = vmov 2131351028  }
  0xff   :  { %v137_v55 = vadd.f32 %v135_v44, %v120_v32  ;;  %v138_v56 = vadd.f32 %v136_v45, %v121_v33  ;;  %v655_v32 = vmov 683565275  }
 0x10b   :  { %v140_v49 = vpop.permute.xlu0 %139 }
 0x10c   :  { %v142_v50 = vpop.permute.xlu1 %141 }
 0x10d   :  { %v144_v53 = vsel %vm143_vm3, %v140_v49, %v142_v50  ;;  %v145_v54 = vsel %vm143_vm3, %v142_v50, %v140_v49 }
 0x10e   :  { %v152_v57 = vmul.f32 %v150_v47, %v144_v53  ;;  %v153_v58 = vmul.f32 %v151_v48, %v145_v54 }
 0x110   :  { %v154_v59 = vadd.f32 %v152_v57, %v137_v55  ;;  %v155_v60 = vadd.f32 %v153_v58, %v138_v56 }
 0x112   :  { %v697_v61 = vadd.f32 %v157_v51, %v154_v59  ;;  %v699_v62 = vadd.f32 %v158_v52, %v155_v60 }
 0x114   :  { %v166_v63 = vand.u32 2139095040, %v697_v61  ;;  %v321_v0 = vand.u32 2139095040, %v699_v62  ;;  %v163_v1 = vand.u32 2147483647, %v697_v61  ;;  %v318_v2 = vand.u32 2147483647, %v699_v62 }
 0x116   :  { %v167_v3 = vshrl.u32 %v166_v63, 23  ;;  %v322_v4 = vshrl.u32 %v321_v0, 23  ;;  %v170_v5 = vand.u32 8388607, %v163_v1  ;;  %v325_v9 = vand.u32 8388607, %v318_v2 }
 0x118   :  { %v494_v6 = vadd.s32 4294967169, %v167_v3  ;;  %v497_v7 = vadd.s32 4294967169, %v322_v4  ;;  %v171_v8 = vor.u32 8388608, %v170_v5  ;;  %v326_v15 = vor.u32 8388608, %v325_v9 }
 0x11a   :  { %v173_v10 = vadd.s32 1, %v494_v6  ;;  %v328_v11 = vadd.s32 1, %v497_v7  ;;  %v709_v14 = vshll.u32 %v171_v8, 8  ;;  %v720_v24 = vshll.u32 %v326_v15, 8 }
 0x11c   :  { %vm174_vm4 = vcmp.gt.s32.totalorder %v173_v10, 0  ;;  %vm329_vm5 = vcmp.gt.s32.totalorder %v328_v11, 0  ;;  %v212_v23 = vand.u32 65535, %v709_v14  ;;  %v213_v51 = vshrl.u32 %v709_v14, 16 }
 0x11d   :  { %v175_v12 = vsel %vm174_vm4, %v173_v10, 0  ;;  %v330_v13 = vsel %vm329_vm5, %v328_v11, 0 }
 0x11e   :  { %v711_v16 = vshrl.u32 %v175_v12, 5  ;;  %v177_v17 = vand.u32 31, %v175_v12  ;;  %v713_v18 = vand.u32 31, %v330_v13  ;;  %v736_v49 = vshrl.u32 %v330_v13, 5 }
 0x120   :  { %v178_v19 = vsub.s32 32, %v177_v17  ;;  %v189_v21 = vshll.u32 %v652_v20, %v177_v17  ;;  %v717_v22 = vsub.s32 32, %v713_v18  ;;  %v192_v27 = vshll.u32 %v653_v25, %v177_v17 }
 0x121   :  { %vm198_vm6 = vcmp.lt.s32.totalorder %v711_v16, 4  ;;  %v180_v33 = vshll.u32 %v655_v32, %v177_v17  ;;  %v183_v38 = vshll.u32 %v656_v34, %v177_v17  ;;  %v344_v41 = vshll.u32 %v652_v20, %v713_v18 }
 0x122   :  { %v190_v26 = vshrl.u32 %v653_v25, %v178_v19  ;;  %v193_v29 = vshrl.u32 %v654_v28, %v178_v19  ;;  %v345_v30 = vshrl.u32 %v653_v25, %v717_v22  ;;  %v348_v31 = vshrl.u32 %v654_v28, %v717_v22 }
 0x123   :  { %v181_v35 = vshrl.u32 %v656_v34, %v178_v19  ;;  %v184_v40 = vshrl.u32 %v657_v39, %v178_v19  ;;  %v186_v43 = vshll.u32 %v657_v39, %v177_v17  ;;  %v187_v44 = vshrl.u32 %v652_v20, %v178_v19 }
 0x124   :  { %v191_v36 = vor.u32 %v190_v26, %v189_v21  ;;  %v194_v37 = vor.u32 %v193_v29, %v192_v27  ;;  %v347_v47 = vshll.u32 %v653_v25, %v713_v18  ;;  %vm195_vm7 = vcmp.lt.s32.totalorder %v711_v16, 1 }
 0x125   :  { %v182_v42 = vor.u32 %v181_v35, %v180_v33  ;;  %v185_v48 = vor.u32 %v184_v40, %v183_v38  ;;  %v188_v50 = vor.u32 %v187_v44, %v186_v43  ;;  %v740_v52 = vor.u32 %v345_v30, %v344_v41 }
 0x126   :  { %v204_v45 = vsel %vm198_vm6, %v191_v36, 920167782  ;;  %v208_v46 = vsel %vm198_vm6, %v194_v37, 1326507024  ;;  %v349_v53 = vor.u32 %v348_v31, %v347_v47  ;;  %vm197_vm8 = vcmp.lt.s32.totalorder %v711_v16, 3 }
 0x127   :  { %v203_v54 = vsel %vm195_vm7, %v182_v42, %v185_v48  ;;  %vm196_vm9 = vcmp.lt.s32.totalorder %v711_v16, 2  ;;  %v205_v55 = vsel %vm197_vm8, %v188_v50, %v204_v45  ;;  %v207_v56 = vsel %vm195_vm7, %v185_v48, %v188_v50 }
 0x128   :  { %v209_v57 = vsel %vm197_vm8, %v191_v36, %v208_v46  ;;  %v179_v58 = vshrl.u32 %v655_v32, %v178_v19  ;;  %v200_v59 = vsel %vm198_vm6, %v188_v50, 2102212464  ;;  %v206_v60 = vsel %vm196_vm9, %v203_v54, %v205_v55 }
 0x129   :  { %v210_v63 = vsel %vm196_vm9, %v207_v56, %v209_v57  ;;  %vm353_vm10 = vcmp.lt.s32.totalorder %v736_v49, 4  ;;  %v236_v4 = vand.u32 65535, %v206_v60  ;;  %v237_v8 = vshrl.u32 %v206_v60, 16 }
 0x12a   :  { %v214_v0 = vand.u32 65535, %v210_v63  ;;  %v215_v3 = vshrl.u32 %v210_v63, 16  ;;  %v359_v5 = vsel %vm353_vm10, %v740_v52, 920167782  ;;  %v363_v6 = vsel %vm353_vm10, %v349_v53, 1326507024 }
 0x12b   :  { %v199_v7 = vsel %vm195_vm7, %v179_v58, %v182_v42  ;;  %v201_v9 = vsel %vm197_vm8, %v185_v48, %v200_v59  ;;  %v335_v12 = vshll.u32 %v655_v32, %v713_v18  ;;  %v239_v13 = vmul.u32 %v237_v8, %v212_v23 }
 0x12c   :  { %v217_v10 = vmul.u32 %v215_v3, %v212_v23  ;;  %v218_v11 = vmul.u32 %v214_v0, %v213_v51  ;;  %v240_v15 = vmul.u32 %v236_v4, %v213_v51  ;;  %v336_v17 = vshrl.u32 %v656_v34, %v717_v22 }
 0x12d   :  { %v338_v19 = vshll.u32 %v656_v34, %v713_v18  ;;  %v216_v21 = vmul.u32 %v214_v0, %v212_v23  ;;  %v219_v25 = vmul.u32 %v215_v3, %v213_v51  ;;  %v238_v27 = vmul.u32 %v236_v4, %v212_v23 }
 0x12e   :  { %v220_v26 = vshll.u32 %v217_v10, 16  ;;  %v221_v28 = vshrl.u32 %v217_v10, 16  ;;  %v222_v29 = vshll.u32 %v218_v11, 16  ;;  %v241_v30 = vmul.u32 %v237_v8, %v213_v51 }
 0x12f   :  { %v242_v31 = vshll.u32 %v239_v13, 16  ;;  %v244_v35 = vshll.u32 %v240_v15, 16  ;;  %v339_v36 = vshrl.u32 %v657_v39, %v717_v22  ;;  %v658_v37 = vmov 0  }
 0x130   :  { %vm224_vm11 = vc.u32 %v216_v21, %v220_v26  ;;  %v226_v33 = vadd.s32 %v220_v26, %v216_v21  ;;  %v776_v34 = vor.u32 %v336_v17, %v335_v12  ;;  %v223_v43 = vshrl.u32 %v218_v11, 16 }
 0x131   :  { %v225_v38 = vsel %vm224_vm11, 1, %v658_v37  ;;  %vm246_vm12 = vc.u32 %v238_v27, %v242_v31  ;;  %v248_v40 = vadd.s32 %v242_v31, %v238_v27  ;;  %v779_v42 = vor.u32 %v339_v36, %v338_v19 }
 0x132   :  { %v227_v41 = vadd.s32 %v225_v38, %v219_v25  ;;  %vm228_vm13 = vc.u32 %v226_v33, %v222_v29  ;;  %v247_v23 = vsel %vm246_vm12, 1, %v658_v37  ;;  %v341_v48 = vshll.u32 %v657_v39, %v713_v18 }
 0x133   :  { %v229_v44 = vsel %vm228_vm13, 1, %v658_v37  ;;  %v249_v45 = vadd.s32 %v247_v23, %v241_v30  ;;  %vm250_vm14 = vc.u32 %v248_v40, %v244_v35  ;;  %v342_v50 = vshrl.u32 %v652_v20, %v717_v22 }
 0x134   :  { %v231_v46 = vadd.s32 %v229_v44, %v227_v41  ;;  %v251_v47 = vsel %vm250_vm14, 1, %v658_v37  ;;  %v243_v51 = vshrl.u32 %v239_v13, 16  ;;  %vm350_vm15 = vcmp.lt.s32.totalorder %v736_v49, 1 }
 0x135   :  { %v253_v53 = vadd.s32 %v251_v47, %v249_v45  ;;  %vm352_vm0 = vcmp.lt.s32.totalorder %v736_v49, 3  ;;  %v343_v55 = vor.u32 %v342_v50, %v341_v48  ;;  %v358_v56 = vsel %vm350_vm15, %v776_v34, %v779_v42 }
 0x136   :  { %v232_v54 = vadd.s32 %v231_v46, %v221_v28  ;;  %v364_v18 = vsel %vm352_vm0, %v740_v52, %v363_v6  ;;  %v245_v39 = vshrl.u32 %v240_v15, 16  ;;  %v796_v57 = vadd.s32 %v248_v40, %v244_v35 }
 0x137   :  { %v254_v20 = vadd.s32 %v253_v53, %v243_v51  ;;  %vm351_vm1 = vcmp.lt.s32.totalorder %v736_v49, 2  ;;  %v360_v59 = vsel %vm352_vm0, %v343_v55, %v359_v5  ;;  %v362_v60 = vsel %vm350_vm15, %v779_v42, %v343_v55 }
 0x138   :  { %v798_v58 = vadd.s32 %v232_v54, %v223_v43  ;;  %v202_v63 = vsel %vm196_vm9, %v199_v7, %v201_v9  ;;  %v361_v52 = vsel %vm351_vm1, %v358_v56, %v360_v59  ;;  %v365_v3 = vsel %vm351_vm1, %v362_v60, %v364_v18 }
 0x139   :  { %v255_v0 = vadd.s32 %v254_v20, %v245_v39  ;;  %v367_v4 = vand.u32 65535, %v720_v24  ;;  %v368_v5 = vshrl.u32 %v720_v24, 16  ;;  %v369_v6 = vand.u32 65535, %v365_v3 }
 0x13a   :  { %vm258_vm2 = vc.u32 %v798_v58, %v796_v57  ;;  %v370_v10 = vshrl.u32 %v365_v3, 16  ;;  %v391_v11 = vand.u32 65535, %v361_v52  ;;  %v392_v16 = vshrl.u32 %v361_v52, 16 }
 0x13b   :  { %v259_v8 = vadd.s32 1, %v255_v0  ;;  %v256_v7 = vmul.u32 %v709_v14, %v202_v63  ;;  %v373_v13 = vmul.u32 %v369_v6, %v368_v5  ;;  %v371_v19 = vmul.u32 %v369_v6, %v367_v4 }
 0x13c   :  { %v372_v12 = vmul.u32 %v370_v10, %v367_v4  ;;  %v394_v17 = vmul.u32 %v392_v16, %v367_v4  ;;  %v395_v25 = vmul.u32 %v391_v11, %v368_v5  ;;  %v374_v27 = vmul.u32 %v370_v10, %v368_v5 }
 0x13d   :  { %v260_v9 = vsel %vm258_vm2, %v259_v8, %v255_v0  ;;  %v393_v28 = vmul.u32 %v391_v11, %v367_v4  ;;  %v377_v30 = vshll.u32 %v373_v13, 16  ;;  %v396_v33 = vmul.u32 %v392_v16, %v368_v5 }
 0x13e   :  { %v261_v15 = vadd.s32 %v260_v9, %v256_v7  ;;  %v375_v21 = vshll.u32 %v372_v12, 16  ;;  %v397_v29 = vshll.u32 %v394_v17, 16  ;;  %v399_v40 = vshll.u32 %v395_v25, 16 }
 0x13f   :  { %v355_v45 = vsel %vm353_vm10, %v343_v55, 2102212464  ;;  %v376_v46 = vshrl.u32 %v372_v12, 16  ;;  %v334_v50 = vshrl.u32 %v655_v32, %v717_v22  ;;  %v378_v53 = vshrl.u32 %v373_v13, 16 }
 0x140   :  { %v262_v26 = vadd.s32 536870912, %v261_v15  ;;  %vm379_vm3 = vc.u32 %v371_v19, %v375_v21  ;;  %v381_v31 = vadd.s32 %v375_v21, %v371_v19  ;;  %vm401_vm4 = vc.u32 %v393_v28, %v397_v29 }
 0x141   :  { %v380_v14 = vsel %vm379_vm3, 1, %v658_v37  ;;  %v403_v36 = vadd.s32 %v397_v29, %v393_v28  ;;  %v402_v41 = vsel %vm401_vm4, 1, %v658_v37  ;;  %v398_v56 = vshrl.u32 %v394_v17, 16 }
 0x142   :  { %v817_v35 = vshrl.u32 %v262_v26, 30  ;;  %v382_v38 = vadd.s32 %v380_v14, %v374_v27  ;;  %vm383_vm5 = vc.u32 %v381_v31, %v377_v30  ;;  %v404_v44 = vadd.s32 %v402_v41, %v396_v33 }
 0x143   :  { %v384_v43 = vsel %vm383_vm5, 1, %v658_v37  ;;  %vm405_vm6 = vc.u32 %v403_v36, %v399_v40  ;;  %v354_v20 = vsel %vm350_vm15, %v334_v50, %v776_v34  ;;  %v356_v55 = vsel %vm352_vm0, %v779_v42, %v355_v45 }
 0x144   :  { %v264_v23 = vshll.u32 %v817_v35, 30  ;;  %v386_v47 = vadd.s32 %v384_v43, %v382_v38  ;;  %v406_v51 = vsel %vm405_vm6, 1, %v658_v37  ;;  %v400_v60 = vshrl.u32 %v395_v25, 16 }
 0x145   :  { %v408_v18 = vadd.s32 %v406_v51, %v404_v44  ;;  %v407_v32 = vadd.s32 %v403_v36, %v399_v40  ;;  %v357_v0 = vsel %vm351_vm1, %v354_v20, %v356_v55  ;;  %v257_v42 = vadd.s32 %v796_v57, %v798_v58 }
 0x146   :  { %v265_v48 = vsub.s32 %v261_v15, %v264_v23  ;;  %v387_v54 = vadd.s32 %v386_v47, %v376_v46  ;;  %v411_v5 = vmul.u32 %v720_v24, %v357_v0  ;;  %vm165_vm11 = vcmp.lt.s32.totalorder %v697_v61, 0 }
 0x147   :  { %v409_v63 = vadd.s32 %v408_v18, %v398_v56  ;;  %vm845_vm12 = vcmp.le.f32.partialorder %v163_v1, 0.7853982  ;;  %v287_v33 = vsub.s32 4, %v817_v35  ;;  %vm858_vm14 = vcmp.le.f32.partialorder %v318_v2, 0.7853982 }
 0x148   :  { %vm266_vm7 = vcmp.lt.s32.totalorder %v265_v48, 0  ;;  %v267_v39 = vsub.s32 0, %v265_v48  ;;  %v388_v59 = vadd.s32 %v387_v54, %v378_v53  ;;  %vm320_vm15 = vcmp.lt.s32.totalorder %v699_v62, 0 }
 0x149   :  { %v410_v52 = vadd.s32 %v409_v63, %v400_v60  ;;  %v288_v1 = vsel %vm165_vm11, %v287_v33, %v817_v35  ;;  %vm306_vm3 = vweird.f32 %v697_v61 }
 0x14a   :  { %v268_v22 = vsel %vm266_vm7, %v267_v39, %v265_v48  ;;  %vm413_vm8 = vc.u32 %v388_v59, %v407_v32  ;;  %v412_v23 = vadd.s32 %v407_v32, %v388_v59  ;;  %v290_v51 = vsel %vm845_vm12, 0, %v288_v1 }
 0x14b   :  { %v269_v37 = vclz %v268_v22  ;;  %v414_v4 = vadd.s32 1, %v410_v52  ;;  %v307_v55 = vadd.s32 3, %v290_v51  ;;  %vm461_vm7 = vweird.f32 %v699_v62 }
 0x14d   :  { %v495_v3 = vadd.s32 4294967294, %v269_v37  ;;  %v415_v34 = vsel %vm413_vm8, %v414_v4, %v410_v52  ;;  %v308_v0 = vand.u32 3, %v307_v55 }
 0x14e   :  { %v416_v8 = vadd.s32 %v415_v34, %v411_v5 }
 0x14f   :  { %vm496_vm9 = vcmp.lt.s32.totalorder %v495_v3, 0  ;;  %vm309_vm0 = vcmp.lt.s32.totalorder %v308_v0, 2  ;;  %vm310_vm1 = vcmp.eq.s32.totalorder %v308_v0, 0  ;;  %vm313_vm2 = vcmp.eq.s32.totalorder %v308_v0, 2 }
 0x150   :  { %v272_v6 = vsel %vm496_vm9, 0, %v495_v3  ;;  %v417_v16 = vadd.s32 536870912, %v416_v8 }
 0x151   :  { %v273_v10 = vsub.s32 32, %v272_v6  ;;  %v277_v11 = vsub.s32 4294967266, %v272_v6  ;;  %v274_v7 = vshll.u32 %v265_v48, %v272_v6 }
 0x152   :  { %v839_v12 = vshrl.u32 %v417_v16, 30 }
 0x153   :  { %v275_v9 = vshrl.u32 %v257_v42, %v273_v10  ;;  %v278_v49 = vadd.s32 127, %v277_v11 }
 0x154   :  { %v419_v17 = vshll.u32 %v839_v12, 30  ;;  %v442_v11 = vsub.s32 4, %v839_v12 }
 0x155   :  { %v276_v13 = vor.u32 %v275_v9, %v274_v7  ;;  %v279_v15 = vshll.u32 %v278_v49, 23 }
 0x156   :  { %v420_v19 = vsub.s32 %v416_v8, %v419_v17 }
 0x157   :  { %v280_v24 = vor.u32 4788187, %v279_v15  ;;  %v283_v25 = vcvt.s32.f32 %v276_v13  ;;  %v443_v15 = vsel %vm320_vm15, %v442_v11, %v839_v12 }
 0x158   :  { %vm421_vm10 = vcmp.lt.s32.totalorder %v420_v19, 0  ;;  %v422_v26 = vsub.s32 0, %v420_v19 }
 0x159   :  { %v281_v21 = vand.u32 2147483647, %v280_v24 }
 0x15a   :  { %v423_v57 = vsel %vm421_vm10, %v422_v26, %v420_v19 }
 0x15b   :  { %v284_v27 = vmul.f32 %v283_v25, %v281_v21  ;;  %v424_v28 = vclz %v423_v57 }
 0x15d   :  { %v285_v58 = vxor.u32 2147483648, %v284_v27  ;;  %v498_v31 = vadd.s32 4294967294, %v424_v28 }
 0x15f   :  { %v286_v30 = vsel %vm165_vm11, %v285_v58, %v284_v27  ;;  %vm499_vm13 = vcmp.lt.s32.totalorder %v498_v31, 0 }
 0x160   :  { %v289_v14 = vsel %vm845_vm12, %v697_v61, %v286_v30  ;;  %v427_v38 = vsel %vm499_vm13, 0, %v498_v31 }
 0x161   :  { %v291_v36 = vmul.f32 %v289_v14, %v289_v14  ;;  %v428_v43 = vsub.s32 32, %v427_v38  ;;  %v432_v44 = vsub.s32 4294967266, %v427_v38  ;;  %v429_v48 = vshll.u32 %v420_v19, %v427_v38 }
 0x162   :  { %v445_v19 = vsel %vm858_vm14, 0, %v443_v15 }
 0x163   :  { %v292_v40 = vmul.f32 -0.001358992, %v291_v36  ;;  %v299_v41 = vmul.f32 -0.00019511016, %v291_v36  ;;  %v430_v47 = vshrl.u32 %v412_v23, %v428_v43  ;;  %v433_v50 = vadd.s32 127, %v432_v44 }
 0x164   :  { %v462_v61 = vadd.s32 3, %v445_v19 }
 0x165   :  { %v293_v45 = vadd.f32 0.041655596, %v292_v40  ;;  %v300_v46 = vadd.f32 0.008332121, %v299_v41  ;;  %v431_v56 = vor.u32 %v430_v47, %v429_v48  ;;  %v434_v18 = vshll.u32 %v433_v50, 23 }
 0x166   :  { %v463_v30 = vand.u32 3, %v462_v61 }
 0x167   :  { %v294_v53 = vmul.f32 %v293_v45, %v291_v36  ;;  %v301_v54 = vmul.f32 %v300_v46, %v291_v36  ;;  %v435_v59 = vor.u32 4788187, %v434_v18  ;;  %v438_v22 = vcvt.s32.f32 %v431_v56 }
 0x168   :  { %vm465_vm4 = vcmp.eq.s32.totalorder %v463_v30, 0  ;;  %vm468_vm5 = vcmp.eq.s32.totalorder %v463_v30, 2  ;;  %vm464_vm6 = vcmp.lt.s32.totalorder %v463_v30, 2 }
 0x169   :  { %v295_v39 = vadd.f32 -0.4999988, %v294_v53  ;;  %v302_v20 = vadd.f32 -0.16666654, %v301_v54  ;;  %v436_v35 = vand.u32 2147483647, %v435_v59 }
 0x16b   :  { %v296_v60 = vmul.f32 %v295_v39, %v291_v36  ;;  %v303_v63 = vmul.f32 %v302_v20, %v291_v36  ;;  %v439_v52 = vmul.f32 %v438_v22, %v436_v35 }
 0x16d   :  { %v297_v32 = vadd.f32 1.0, %v296_v60  ;;  %v304_v37 = vadd.f32 1.0, %v303_v63  ;;  %v440_v5 = vxor.u32 2147483648, %v439_v52 }
 0x16f   :  { %v305_v3 = vmul.f32 %v304_v37, %v289_v14  ;;  %v314_v4 = vxor.u32 2147483648, %v297_v32  ;;  %v441_v8 = vsel %vm320_vm15, %v440_v5, %v439_v52 }
 0x170   :  { %v444_v16 = vsel %vm858_vm14, %v699_v62, %v441_v8 }
 0x171   :  { %v311_v34 = vxor.u32 2147483648, %v305_v3  ;;  %v315_v10 = vsel %vm313_vm2, %v314_v4, %v305_v3  ;;  %v446_v7 = vmul.f32 %v444_v16, %v444_v16 }
 0x173   :  { %v312_v42 = vsel %vm310_vm1, %v297_v32, %v311_v34  ;;  %v447_v49 = vmul.f32 -0.001358992, %v446_v7  ;;  %v454_v13 = vmul.f32 -0.00019511016, %v446_v7 }
 0x174   :  { %v316_v2 = vsel %vm309_vm0, %v312_v42, %v315_v10 }
 0x175   :  { %v317_v9 = vsel %vm306_vm3, nan, %v316_v2  ;;  %v448_v17 = vadd.f32 0.041655596, %v447_v49  ;;  %v455_v24 = vadd.f32 0.008332121, %v454_v13 }
 0x176   :  { %473 = vst [vmem:[#allocation10] sm:$0xff] %v317_v9 }
 0x177   :  { %v449_v21 = vmul.f32 %v448_v17, %v446_v7  ;;  %v456_v25 = vmul.f32 %v455_v24, %v446_v7 }
 0x179   :  { %v450_v26 = vadd.f32 -0.4999988, %v449_v21  ;;  %v457_v27 = vadd.f32 -0.16666654, %v456_v25 }
 0x17b   :  { %v451_v57 = vmul.f32 %v450_v26, %v446_v7  ;;  %v458_v58 = vmul.f32 %v457_v27, %v446_v7 }
 0x17d   :  { %v452_v28 = vadd.f32 1.0, %v451_v57  ;;  %v459_v29 = vadd.f32 1.0, %v458_v58 }
 0x17f   :  { %v460_v31 = vmul.f32 %v459_v29, %v444_v16  ;;  %v469_v33 = vxor.u32 2147483648, %v452_v28 }
 0x181   :  { %v466_v14 = vxor.u32 2147483648, %v460_v31  ;;  %v470_v36 = vsel %vm468_vm5, %v469_v33, %v460_v31 }
 0x183   :  { %v467_v12 = vsel %vm465_vm4, %v452_v28, %v466_v14 }
 0x184   :  { %v471_v38 = vsel %vm464_vm6, %v467_v12, %v470_v36 }
 0x185   :  { %v472_v40 = vsel %vm461_vm7, nan, %v471_v38 }
 0x186   :  { %474 = vst [vmem:[#allocation10 + $0x8] sm:$0xff] %v472_v40 }
 0x187   :  { %485 = dma.vmem_to_hbm [thread:$0]  %s481_s10, 256, %s483_s13, [#allocation4]  }
 0x188   :  { %642 = dma.done.wait [#allocation4], 256  }
 0x189   :  { %643 = vsyncadd [#allocation4], 4294967040 }
 0x18a   :  { %490 = vsyncpa [#allocation3], 1 }
 0x18b   :  { %491 = vsyncpa [#allocation6], 1 }
 0x18c   :  { %492 = vsyncpa [#allocation9], 1 }
 0x18d   :  { %493 = vsyncpa [#allocation4], 1 }

</bundles_post_ra>
